<compile_context>
chip_gen: v7x
topology: tpu7x:2x2x1
jax: 0.10.0
libtpu: 0.0.40
codegen_flags: <defaults>
</compile_context>

<pallas_src>
import jax
import jax.numpy as jnp
from jax.experimental import pallas as pl
from jax.experimental.pallas import tpu as pltpu


def _permute_mul_add_kernel(x_ref, o_ref):
    # x_ref: (tb, tm, tn) block in VMEM; o_ref: (tb, tn, tm) block in VMEM.
    # Apply the affine on the VPU first, then transpose the minor two dims on
    # the XLU — no full-dim fallback ever reaches this body.
    o_ref[...] = jnp.swapaxes(x_ref[...] * 2.0 + 4.0, -1, -2)


_TM_CAP = 1024  # output lane dim (contiguous write chunk) — keep large
_TN_CAP = 512   # input lane dim — shrink this one first under VMEM pressure


def _choose_tiles(B, M, N, itemsize):
    """Bounded, lane-friendly tiles; never falls back to an unbounded full dim."""
    # Dims <= cap use the full dim (legal via the full-array-dims exception);
    # larger dims use a fixed 128-multiple tile and a cdiv grid with masked
    # edge blocks, keeping the VMEM footprint bounded on v5e/v6e/v7x.
    tm = M if M <= _TM_CAP else _TM_CAP
    tn = N if N <= _TN_CAP else _TN_CAP

    # Tiny (M, N) slabs: batch several examples per grid step to amortize the
    # per-step overhead (exact divisors of B only, so no leading-dim masking).
    tb = 1
    if tm * tn * itemsize < (1 << 20):
        for cand in (8, 4, 2):
            if cand <= B and B % cand == 0:
                tb = cand
                break
    return tb, tm, tn


def permute_mul_add(x):
    """x: (B, M, N) -> (B, N, M), computed as permute(0, 2, 1)(x) * 2 + 4."""
    B, M, N = x.shape
    tb, tm, tn = _choose_tiles(B, M, N, x.dtype.itemsize)
    # M-blocks leading so a parallel axis has >=2 steps even when B == 1
    # (lets v7x shard the grid across its 2 TensorCores; no-op on v5e/v6e).
    grid = (pl.cdiv(M, tm), pl.cdiv(N, tn), pl.cdiv(B, tb))

    return pl.pallas_call(
        _permute_mul_add_kernel,
        out_shape=jax.ShapeDtypeStruct((B, N, M), x.dtype),
        grid_spec=pltpu.PrefetchScalarGridSpec(
            num_scalar_prefetch=0,
            grid=grid,
            in_specs=[
                pl.BlockSpec((tb, tm, tn), lambda i, j, b: (b, i, j)),
            ],
            out_specs=pl.BlockSpec((tb, tn, tm), lambda i, j, b: (b, j, i)),
        ),
        compiler_params=pltpu.CompilerParams(
            dimension_semantics=("parallel", "parallel", "parallel"),
            vmem_limit_bytes=64 * 1024 * 1024,
        ),
        cost_estimate=pl.CostEstimate(
            flops=2 * B * M * N,
            transcendentals=0,
            bytes_accessed=2 * B * M * N * x.dtype.itemsize,
        ),
    )(x)


if __name__ == "__main__":
    key = jax.random.PRNGKey(0)
    k1, k2 = jax.random.split(key)

    # Small shape consistent with the module's 3-D input (original was (1, 2, 2));
    # exercises the batch-blocked tiny-slab path (tb = 2, grid = (1, 1, 1)).
    x_small = jax.random.normal(k1, (2, 8, 16), dtype=jnp.float32)
    out_small = jax.block_until_ready(permute_mul_add(x_small))
    ref_small = jnp.transpose(x_small, (0, 2, 1)) * 2.0 + 4.0
    assert out_small.shape == (2, 16, 8)
    assert out_small.dtype == jnp.float32
    assert jnp.allclose(out_small, ref_small, atol=1e-6, rtol=1e-6)

    # Moderate, non-128-divisible shape exercising the cdiv grid with masked
    # edge blocks (grid = (2, 2, 1)) and the M-leading parallel axis (B == 1).
    x_tiled = jax.random.normal(k2, (1, 1100, 600), dtype=jnp.float32)
    out_tiled = jax.block_until_ready(permute_mul_add(x_tiled))
    ref_tiled = jnp.transpose(x_tiled, (0, 2, 1)) * 2.0 + 4.0
    assert out_tiled.shape == (1, 600, 1100)
    assert jnp.allclose(out_tiled, ref_tiled, atol=1e-6, rtol=1e-6)

    print("KERNEL_OK")
</pallas_src>

<mosaic_0001>
module attributes {stable_mosaic.version = 11 : i64} {
  func.func @_permute_mul_add_kernel(%arg0: i32, %arg1: i32, %arg2: i32, %arg3: memref<2x8x16xf32, #tpu.memory_space<vmem>>, %arg4: memref<2x16x8xf32, #tpu.memory_space<vmem>>) attributes {dimension_semantics = [#tpu.dimension_semantics<parallel>, #tpu.dimension_semantics<parallel>, #tpu.dimension_semantics<parallel>], iteration_bounds = array<i64: 1, 1, 1>, scalar_prefetch = 0 : i64, scratch_operands = 0 : i64, tpu.core_type = #tpu.core_type<tc>, window_params = [{transform_indices = @transform_0, window_bounds = array<i64: 2, 8, 16>}, {transform_indices = @transform_1, window_bounds = array<i64: 2, 16, 8>}]} {
    %c0 = arith.constant 0 : index
    %c0_0 = arith.constant 0 : index
    %c0_1 = arith.constant 0 : index
    %0 = vector.load %arg3[%c0, %c0_0, %c0_1] : memref<2x8x16xf32, #tpu.memory_space<vmem>>, vector<2x8x16xf32>
    %cst = arith.constant 2.000000e+00 : f32
    %1 = vector.broadcast %cst : f32 to vector<2x8x16xf32>
    %2 = arith.mulf %0, %1 : vector<2x8x16xf32>
    %cst_2 = arith.constant 4.000000e+00 : f32
    %3 = vector.broadcast %cst_2 : f32 to vector<2x8x16xf32>
    %4 = arith.addf %2, %3 : vector<2x8x16xf32>
    %5 = tpu.transpose %4, [0, 2, 1] : vector<2x8x16xf32> -> vector<2x16x8xf32>
    %c0_3 = arith.constant 0 : index
    %c0_4 = arith.constant 0 : index
    %c0_5 = arith.constant 0 : index
    %6 = vector.load %arg4[%c0_3, %c0_4, %c0_5] : memref<2x16x8xf32, #tpu.memory_space<vmem>>, vector<2x16x8xf32>
    tpu.vector_store %arg4[%c0_3, %c0_4, %c0_5], %5 {strides = array<i32>} : memref<2x16x8xf32, #tpu.memory_space<vmem>>, vector<2x16x8xf32>,
    return
  }
  func.func @transform_0(%arg0: i32, %arg1: i32, %arg2: i32) -> (i32, i32, i32) {
    %c0_i32 = arith.constant 0 : i32
    return %arg2, %arg0, %arg1 : i32, i32, i32
  }
  func.func @transform_1(%arg0: i32, %arg1: i32, %arg2: i32) -> (i32, i32, i32) {
    %c0_i32 = arith.constant 0 : i32
    return %arg2, %arg1, %arg0 : i32, i32, i32
  }
}

</mosaic_0001>

<bundles_post_ra>
// kernel: tpu_custom_call.1
= control target key start
LH: loop header
LB: loop body
LE: loop exit
PB: predicated region body
PF: predicated region fallthrough
CT: control target
= control target key end

     0   :  { %6 = vsyncpa [#allocation3], 0  ;;  %s212_s0 = inlined_call_operand.hbm [shape: f32[2,8,16], index: 0, kind: input, shape index: {}]   ;;  %s213_s1 = inlined_call_operand.hbm [shape: f32[2,16,8], index: 1, kind: output, shape index: {}]  }
   0x1   :  { %7 = vsyncpa [#allocation4], 0  ;;  %s168_s6 = smov [#allocation2]   ;;  %s120_s10 = scalar_lea.hbm %s212_s0, 256 }
   0x2   :  { %s13_s7 = sshll.u32 %s168_s6, 4  ;;  %p121_p0 = scmp.ne.s32.totalorder %s212_s0, %s120_s10  ;;  %s14_s7 = int_to_ptr.vmem [resolvable:$true] %s13_s7 }
   0x3   :  { %p124_p1 = scmp.lt.u32.totalorder %s120_s10, %s212_s0 }
   0x5   :  { %p126_p2 = pnand %p124_p1, %p121_p0 }
   0x7   :  { %129 = shalt.err (!%p126_p2)
}
   0x8   :  { %s130_s15 = scalar_lea.vmem %s14_s7, 256  ;;  %p135_p4 = scmp.lt.s32.totalorder %s14_s7, %s14_s7 }
   0x9   :  { %p131_p3 = scmp.ne.s32.totalorder %s14_s7, %s130_s15  ;;  %p136_p5 = scmp.lt.s32.totalorder %s130_s15, %s130_s15 }
   0xb   :  { %p137_p6 = por %p136_p5, %p135_p4 }
   0xd   :  { %p138_p7 = pnand %p137_p6, %p131_p3 }
   0xf   :  { %141 = shalt.err (!%p138_p7)
}
  0x10   :  { %s169_s16 = smov 128   ;;  %s170_s17 = smov 8  }
  0x11   :  { %19 = dma.hbm_to_vmem [thread:$0]  %s212_s0, 256, %s14_s7, [#allocation3], %s169_s16, %s169_s16, %s170_s17  }
  0x12   :  { %164 = dma.done.wait [#allocation3], 256  }
  0x13   :  { %165 = vsyncadd [#allocation3], 4294967040  ;;  %v23_v0 = vld [vmem:[#allocation2] sm:$0xff]  ;;  %v24_v1 = vld [vmem:[#allocation2 + $0x8] sm:$0xff]  ;;  %vm93_vm0 = vcmask 64512   ;;  %s171_s20 = smov [#allocation5]  }
  0x14   :  { %v25_v2 = vmul.f32 2.0, %v23_v0  ;;  %v26_v3 = vmul.f32 2.0, %v24_v1  ;;  %s103_s21 = sshll.u32 %s171_s20, 4  ;;  %s104_s21 = int_to_ptr.vmem [resolvable:$true] %s103_s21 }
  0x15   :  { %s142_s0 = scalar_lea.vmem %s104_s21, 512  ;;  %p147_p9 = scmp.lt.s32.totalorder %s104_s21, %s104_s21 }
  0x16   :  { %v27_v4 = vadd.f32 4.0, %v25_v2  ;;  %v28_v5 = vadd.f32 4.0, %v26_v3  ;;  %p143_p8 = scmp.ne.s32.totalorder %s104_s21, %s142_s0  ;;  %p148_p10 = scmp.lt.s32.totalorder %s142_s0, %s142_s0 }
  0x18   :  { %29 = vxpose.xlu0.b32.start.end [1/1] (short) (narrow) %v27_v4, 16  ;;  %p149_p11 = por %p148_p10, %p147_p9 }
  0x1a   :  { %p150_p12 = pnand %p149_p11, %p143_p8 }
  0x1d   :  { %61 = vxpose.xlu0.b32.start.end [1/1] (short) (narrow) %v28_v5, 16 }
  0x98   :  { %v45_v6 = vpop.trf.xlu0 }
  0x99   :  { %94 = vst.msk [vmem:[#allocation5] sm:$0xff] %vm93_vm0, %v45_v6 }
  0x9c   :  { %v46_v7 = vpop.trf.xlu0 }
  0x9d   :  { %95 = vst.msk [vmem:[#allocation5 + $0x8] sm:$0xff] %vm93_vm0, %v46_v7 }
  0xa0   :  { %v77_v8 = vpop.trf.xlu0 }
  0xa1   :  { %96 = vst.msk [vmem:[#allocation5 + $0x10] sm:$0xff] %vm93_vm0, %v77_v8 }
  0xa4   :  { %v78_v9 = vpop.trf.xlu0 }
  0xa5   :  { %97 = vst.msk [vmem:[#allocation5 + $0x18] sm:$0xff] %vm93_vm0, %v78_v9 }
  0xa6   :  { %153 = shalt.err (!%p150_p12)
}
  0xa7   :  { %s154_s24 = scalar_lea.hbm %s213_s1, 512 }
  0xa8   :  { %p155_p13 = scmp.ne.s32.totalorder %s213_s1, %s154_s24  ;;  %p158_p0 = scmp.lt.u32.totalorder %s154_s24, %s213_s1 }
  0xaa   :  { %p160_p1 = pnand %p158_p0, %p155_p13 }
  0xac   :  { %163 = shalt.err (!%p160_p1)
}
  0xad   :  { %109 = dma.vmem_to_hbm [thread:$0]  %s104_s21, 512, %s213_s1, [#allocation4], %s169_s16, %s169_s16, %s170_s17  }
  0xae   :  { %166 = dma.done.wait [#allocation4], 512  }
  0xaf   :  { %167 = vsyncadd [#allocation4], 4294966784 }
  0xb0   :  { %113 = vsyncpa [#allocation3], 1 }
  0xb1   :  { %114 = vsyncpa [#allocation4], 1 }

</bundles_post_ra>
